<compile_context>
chip_gen: v7x
topology: tpu7x:2x2x1
jax: 0.10.0
libtpu: 0.0.40
codegen_flags: <defaults>
</compile_context>

<pallas_src>
import functools

import jax
import jax.numpy as jnp
from jax import lax
from jax.experimental import pallas as pl
from jax.experimental.pallas import tpu as pltpu


def _vmem_spec():
    return pl.BlockSpec(memory_space=pltpu.MemorySpace.VMEM)


# ----------------------------------------------------------------------------
# Fused forward kernel.
#   x_ref   : (B, L + 2*pad1, Cin)  channels-last, zero-padded input
#   w1_ref  : (K1*Cin, C1)          conv1 weight, unfolded (k-major rows)
#   b1_ref  : (1, C1)               conv1 bias
#   w2_ref  : (K2*C1, C2)           conv2 weight, unfolded, BN1 scale folded in
#   b2p_ref : (1, L2, C2)           conv2 bias + BN1-shift per-position term
#   wl1_ref : (L2*C2, F1)           linear_1 weight, flatten-permuted, BN2 folded
#   bl1_ref : (1, F1)               linear_1 bias, BN2 folded
#   wl2_ref : (F1, F2)              linear_2 weight
#   bl2_ref : (1, F2)               linear_2 bias
#   o_ref   : (B, 1, F2)            softmax(dim=0) output (unit dim squeezed outside)
#   z1_ref  : VMEM scratch (B, L1 + 2*pad2, C1)  zero-padded conv1 activation
# ----------------------------------------------------------------------------
def fused_forward_kernel(x_ref, w1_ref, b1_ref, w2_ref, b2p_ref,
                         wl1_ref, bl1_ref, wl2_ref, bl2_ref,
                         o_ref, z1_ref, *, k1, k2, pad2):
    # ---- conv block 1: Conv1d + bias + ReLU (its BN is folded into block 2) --
    x = x_ref[...]                                   # (B, L + 2*pad1, Cin)
    L1 = x.shape[1] - k1 + 1
    x1u = jnp.concatenate([x[:, k:k + L1, :] for k in range(k1)], axis=-1)
    y1 = jnp.einsum('blf,fo->blo', x1u, w1_ref[...],
                    preferred_element_type=jnp.float32)
    r1 = jnp.maximum(y1 + b1_ref[...], 0.0)          # (B, L1, C1)

    # ---- zero-pad conv1 activation into VMEM scratch (conv2 'same' padding) --
    z1_ref[...] = jnp.zeros_like(z1_ref)
    z1_ref[:, pad2:pad2 + L1, :] = r1
    xp2 = z1_ref[...]                                # (B, L1 + 2*pad2, C1)

    # ---- conv block 2: Conv1d (BN1-scaled weights) + positional bias + ReLU --
    L2 = xp2.shape[1] - k2 + 1
    x2u = jnp.concatenate([xp2[:, k:k + L2, :] for k in range(k2)], axis=-1)
    y2 = jnp.einsum('blf,fo->blo', x2u, w2_ref[...],
                    preferred_element_type=jnp.float32)
    r2 = jnp.maximum(y2 + b2p_ref[...], 0.0)         # (B, L2, C2)

    # ---- flatten, l-major (matches the permuted linear_1 weight columns) -----
    # Keep a unit middle dim to avoid any in-kernel squeeze/relayout.
    r2_flat = jnp.concatenate([r2[:, l:l + 1, :] for l in range(L2)],
                              axis=-1)               # (B, 1, L2*C2)

    # ---- linear_1 (BN2 folded) + ReLU ----------------------------------------
    h = jnp.einsum('bxf,fo->bxo', r2_flat, wl1_ref[...],
                   preferred_element_type=jnp.float32)
    h = jnp.maximum(h + bl1_ref[...], 0.0)           # (B, 1, F1)

    # ---- linear_2 + softmax over dim=0 (batch), matching nn.Softmax(dim=0) ---
    logits = jnp.einsum('bxf,fo->bxo', h, wl2_ref[...],
                        preferred_element_type=jnp.float32)
    logits = logits + bl2_ref[...]                   # (B, 1, F2)
    m = jnp.max(logits, axis=0, keepdims=True)
    e = jnp.exp(logits - m)
    s = jnp.sum(e, axis=0, keepdims=True)
    o_ref[...] = (e / s).astype(o_ref.dtype)


# ----------------------------------------------------------------------------
# Trace-time parameter preparation: all folds / permutations / transposes done
# once in plain f32 JAX, outside the hot path.
# ----------------------------------------------------------------------------
def prepare_params(params, config, seq_len, eps=1e-5):
    cin, c1, k1 = config['conv1d_1'][:3]
    pad1 = config['conv1d_1'][3] if len(config['conv1d_1']) > 3 else 0
    _, c2, k2 = config['conv1d_2'][:3]
    pad2 = config['conv1d_2'][3] if len(config['conv1d_2']) > 3 else 0
    L1 = seq_len + 2 * pad1 - k1 + 1
    L2 = L1 + 2 * pad2 - k2 + 1

    p1, p2 = params['conv1d_1'], params['conv1d_2']
    l1, l2 = params['linear_1'], params['linear_2']
    assert config['linear_1'][0] == c2 * L2, "flatten size mismatch"

    # conv1: (Cout, Cin, K) -> unfolded (K*Cin, Cout), k-major rows.
    w1 = jnp.transpose(p1['weight'], (2, 1, 0)).reshape(k1 * cin, c1)
    b1 = p1['bias'].reshape(1, c1)

    # BatchNorm1d eval affines.
    scale1 = p1['gamma'] / jnp.sqrt(p1['run_var'] + eps)
    shift1 = p1['beta'] - p1['run_mean'] * scale1
    scale2 = p2['gamma'] / jnp.sqrt(p2['run_var'] + eps)
    shift2 = p2['beta'] - p2['run_mean'] * scale2

    # Fold BN1 scale into conv2's input channels.
    w2_kio = jnp.transpose(p2['weight'], (2, 1, 0))            # (K2, C1, C2)
    w2 = (w2_kio * scale1[None, :, None]).reshape(k2 * c1, c2)

    # Fold BN1 shift + conv2 bias into an exact per-position bias: conv2 of the
    # zero-padded constant shift1 field (correct at the padded borders too).
    w2_flat = w2_kio.reshape(k2 * c1, c2)                      # original (unscaled)
    sfield = jnp.pad(jnp.broadcast_to(shift1, (L1, c1)), ((pad2, pad2), (0, 0)))
    sunf = jnp.concatenate([sfield[k:k + L2, :] for k in range(k2)], axis=-1)
    pos_shift = jnp.dot(sunf, w2_flat, precision=lax.Precision.HIGHEST)
    b2p = (p2['bias'][None, :] + pos_shift).reshape(1, L2, c2)

    # linear_1: permute columns from PyTorch (c*L2 + l) flatten order to the
    # in-kernel channels-last (l*c2 + c) order, then fold BN2 scale/shift in.
    f1 = config['linear_1'][1]
    wp = l1['weight'].reshape(f1, c2, L2).transpose(0, 2, 1).reshape(f1, L2 * c2)
    scale2_col = jnp.tile(scale2, L2)
    shift2_col = jnp.tile(shift2, L2)
    wl1 = wp.T * scale2_col[:, None]                           # (L2*c2, F1)
    bl1 = (jnp.dot(shift2_col, wp.T, precision=lax.Precision.HIGHEST)
           + l1['bias']).reshape(1, f1)

    wl2 = l2['weight'].T                                       # (F1, F2)
    bl2 = l2['bias'].reshape(1, -1)

    return dict(w1=w1, b1=b1, w2=w2, b2p=b2p, wl1=wl1, bl1=bl1, wl2=wl2, bl2=bl2)


def forward(x_ncl, prepped, config):
    """Fused forward: one pallas_call, single tiny (B, num_classes) HBM store."""
    B, _, L = x_ncl.shape
    k1 = config['conv1d_1'][2]
    pad1 = config['conv1d_1'][3] if len(config['conv1d_1']) > 3 else 0
    k2 = config['conv1d_2'][2]
    pad2 = config['conv1d_2'][3] if len(config['conv1d_2']) > 3 else 0
    c1 = config['conv1d_1'][1]
    L1 = L + 2 * pad1 - k1 + 1
    n_out = prepped['wl2'].shape[1]

    # One-time input layout prep: NCW -> channels-last (B, L, Cin) + zero pad.
    x_blc = jnp.transpose(x_ncl, (0, 2, 1))
    x_pad = jnp.pad(x_blc, ((0, 0), (pad1, pad1), (0, 0)))

    kernel = functools.partial(fused_forward_kernel, k1=k1, k2=k2, pad2=pad2)
    out = pl.pallas_call(
        kernel,
        out_shape=jax.ShapeDtypeStruct((B, 1, n_out), jnp.float32),
        in_specs=[_vmem_spec()] * 9,
        out_specs=_vmem_spec(),
        scratch_shapes=[pltpu.VMEM((B, L1 + 2 * pad2, c1), jnp.float32)],
    )(x_pad, prepped['w1'], prepped['b1'], prepped['w2'], prepped['b2p'],
      prepped['wl1'], prepped['bl1'], prepped['wl2'], prepped['bl2'])
    return out.reshape(B, n_out)


# ----------------------------------------------------------------------------
# Parameter construction (same initialization scheme as before).
# ----------------------------------------------------------------------------
def init_params(config, key):
    params = {}
    for name in config:
        if 'conv1d' in name:
            cin, cout, _ = config[name][0], config[name][1], config[name][2]
            key, k1, k2, k3, k4 = jax.random.split(key, 5)
            params[name] = dict(
                weight=0.1 * jax.random.normal(k1, (cout, cin, config[name][2]), jnp.float32),
                bias=0.1 * jax.random.normal(k2, (cout,), jnp.float32),
                gamma=1.0 + 0.1 * jax.random.normal(k3, (cout,), jnp.float32),
                beta=0.1 * jax.random.normal(k4, (cout,), jnp.float32),
                run_mean=jnp.zeros((cout,), jnp.float32),
                run_var=jnp.ones((cout,), jnp.float32),
            )
        elif 'linear' in name:
            fin, fout = config[name][0], config[name][1]
            key, k1, k2 = jax.random.split(key, 3)
            params[name] = dict(
                weight=0.1 * jax.random.normal(k1, (fout, fin), jnp.float32),
                bias=0.1 * jax.random.normal(k2, (fout,), jnp.float32),
            )
    return params


# Pure-JAX reference (unfused, un-folded) for verification ---------------------
def forward_ref(x, params, config, eps=1e-5):
    h = x
    for name in ('conv1d_1', 'conv1d_2'):
        p = params[name]
        pad = config[name][3] if len(config[name]) > 3 else 0
        h = lax.conv_general_dilated(
            h, p['weight'], window_strides=(1,), padding=[(pad, pad)],
            dimension_numbers=('NCH', 'OIH', 'NCH'))
        h = h + p['bias'][None, :, None]
        h = jnp.maximum(h, 0.0)
        h = (h - p['run_mean'][None, :, None]) / jnp.sqrt(
            p['run_var'][None, :, None] + eps)
        h = h * p['gamma'][None, :, None] + p['beta'][None, :, None]
    h = h.reshape(h.shape[0], -1)
    h = jnp.maximum(h @ params['linear_1']['weight'].T + params['linear_1']['bias'], 0.0)
    h = h @ params['linear_2']['weight'].T + params['linear_2']['bias']
    return jax.nn.softmax(h, axis=0)


if __name__ == "__main__":
    B, C_IN, L = 2, 4, 16
    config = {
        'conv1d_1': [C_IN, 8, 3, 1],   # Conv1d(4, 8, k=3, padding=1)
        'conv1d_2': [8, 8, 3, 1],      # Conv1d(8, 8, k=3, padding=1)
        'linear_1': [8 * L, 32],
        'linear_2': [32, 5],
    }

    key = jax.random.PRNGKey(0)
    kx, kp = jax.random.split(key)
    x = jax.random.normal(kx, (B, C_IN, L), jnp.float32)
    params = init_params(config, kp)

    prepped = prepare_params(params, config, seq_len=L)   # one-time fold/permute
    out = jax.block_until_ready(forward(x, prepped, config))
    ref = jax.block_until_ready(forward_ref(x, params, config))

    assert out.shape == (B, 5)
    assert jnp.allclose(out, ref, rtol=1e-3, atol=1e-4), "mismatch vs reference"
    print("KERNEL_OK")
</pallas_src>

<mosaic_0001>
module attributes {stable_mosaic.version = 11 : i64} {
  func.func @fused_forward_kernel(%arg0: memref<2x18x4xf32, #tpu.memory_space<vmem>>, %arg1: memref<12x8xf32, #tpu.memory_space<vmem>>, %arg2: memref<1x8xf32, #tpu.memory_space<vmem>>, %arg3: memref<24x8xf32, #tpu.memory_space<vmem>>, %arg4: memref<1x16x8xf32, #tpu.memory_space<vmem>>, %arg5: memref<128x32xf32, #tpu.memory_space<vmem>>, %arg6: memref<1x32xf32, #tpu.memory_space<vmem>>, %arg7: memref<32x5xf32, #tpu.memory_space<vmem>>, %arg8: memref<1x5xf32, #tpu.memory_space<vmem>>, %arg9: memref<2x1x5xf32, #tpu.memory_space<vmem>>, %arg10: memref<2x18x8xf32, #tpu.memory_space<vmem>>) attributes {dimension_semantics = [], scalar_prefetch = 0 : i64, scratch_operands = 1 : i64, tpu.core_type = #tpu.core_type<tc>} {
    %c0 = arith.constant 0 : index
    %c0_0 = arith.constant 0 : index
    %c0_1 = arith.constant 0 : index
    %0 = vector.load %arg0[%c0, %c0_0, %c0_1] : memref<2x18x4xf32, #tpu.memory_space<vmem>>, vector<2x18x4xf32>
    %1 = vector.extract_strided_slice %0 {offsets = [0, 0, 0], sizes = [2, 16, 4], strides = [1, 1, 1]} : vector<2x18x4xf32> to vector<2x16x4xf32>
    %2 = vector.extract_strided_slice %0 {offsets = [0, 1, 0], sizes = [2, 16, 4], strides = [1, 1, 1]} : vector<2x18x4xf32> to vector<2x16x4xf32>
    %3 = vector.extract_strided_slice %0 {offsets = [0, 2, 0], sizes = [2, 16, 4], strides = [1, 1, 1]} : vector<2x18x4xf32> to vector<2x16x4xf32>
    %4 = tpu.concatenate %1, %2, %3 in 2 : vector<2x16x4xf32>, vector<2x16x4xf32>, vector<2x16x4xf32> -> vector<2x16x12xf32>
    %c0_2 = arith.constant 0 : index
    %c0_3 = arith.constant 0 : index
    %5 = vector.load %arg1[%c0_2, %c0_3] : memref<12x8xf32, #tpu.memory_space<vmem>>, vector<12x8xf32>
    "tpu.trace_start"() <{level = 10 : i32, message = "blf,fo->blo"}> : () -> ()
    %cst = arith.constant dense<0.000000e+00> : vector<2x16x8xf32>
    %6 = tpu.matmul %4, %5, %cst {dimension_numbers = #tpu.dot_dimension_numbers<[2], [0], [0, 1], [1], [0, 0, 0, 1, 1, 1], [], []>} : vector<2x16x12xf32>, vector<12x8xf32>, vector<2x16x8xf32> -> vector<2x16x8xf32>
    "tpu.trace_stop"() : () -> ()
    %c0_4 = arith.constant 0 : index
    %c0_5 = arith.constant 0 : index
    %7 = vector.load %arg2[%c0_4, %c0_5] : memref<1x8xf32, #tpu.memory_space<vmem>>, vector<1x8xf32>
    %8 = vector.shape_cast %7 : vector<1x8xf32> to vector<1x1x8xf32>
    %9 = vector.broadcast %8 : vector<1x1x8xf32> to vector<2x16x8xf32>
    %10 = arith.addf %6, %9 : vector<2x16x8xf32>
    %cst_6 = arith.constant 0.000000e+00 : f32
    %11 = vector.broadcast %cst_6 : f32 to vector<2x16x8xf32>
    %12 = arith.maximumf %10, %11 : vector<2x16x8xf32>
    %cst_7 = arith.constant 0.000000e+00 : f32
    %13 = vector.broadcast %cst_7 : f32 to vector<2x18x8xf32>
    %c0_8 = arith.constant 0 : index
    %c0_9 = arith.constant 0 : index
    %c0_10 = arith.constant 0 : index
    %14 = vector.load %arg10[%c0_8, %c0_9, %c0_10] : memref<2x18x8xf32, #tpu.memory_space<vmem>>, vector<2x18x8xf32>
    tpu.vector_store %arg10[%c0_8, %c0_9, %c0_10], %13 {strides = array<i32>} : memref<2x18x8xf32, #tpu.memory_space<vmem>>, vector<2x18x8xf32>,
    %c0_11 = arith.constant 0 : index
    %c1 = arith.constant 1 : index
    %c0_12 = arith.constant 0 : index
    %15 = vector.load %arg10[%c0_11, %c1, %c0_12] : memref<2x18x8xf32, #tpu.memory_space<vmem>>, vector<2x16x8xf32>
    tpu.vector_store %arg10[%c0_11, %c1, %c0_12], %12 {strides = array<i32>} : memref<2x18x8xf32, #tpu.memory_space<vmem>>, vector<2x16x8xf32>,
    %c0_13 = arith.constant 0 : index
    %c0_14 = arith.constant 0 : index
    %c0_15 = arith.constant 0 : index
    %16 = vector.load %arg10[%c0_13, %c0_14, %c0_15] : memref<2x18x8xf32, #tpu.memory_space<vmem>>, vector<2x18x8xf32>
    %17 = vector.extract_strided_slice %16 {offsets = [0, 0, 0], sizes = [2, 16, 8], strides = [1, 1, 1]} : vector<2x18x8xf32> to vector<2x16x8xf32>
    %18 = vector.extract_strided_slice %16 {offsets = [0, 1, 0], sizes = [2, 16, 8], strides = [1, 1, 1]} : vector<2x18x8xf32> to vector<2x16x8xf32>
    %19 = vector.extract_strided_slice %16 {offsets = [0, 2, 0], sizes = [2, 16, 8], strides = [1, 1, 1]} : vector<2x18x8xf32> to vector<2x16x8xf32>
    %20 = tpu.concatenate %17, %18, %19 in 2 : vector<2x16x8xf32>, vector<2x16x8xf32>, vector<2x16x8xf32> -> vector<2x16x24xf32>
    %c0_16 = arith.constant 0 : index
    %c0_17 = arith.constant 0 : index
    %21 = vector.load %arg3[%c0_16, %c0_17] : memref<24x8xf32, #tpu.memory_space<vmem>>, vector<24x8xf32>
    "tpu.trace_start"() <{level = 10 : i32, message = "blf,fo->blo"}> : () -> ()
    %cst_18 = arith.constant dense<0.000000e+00> : vector<2x16x8xf32>
    %22 = tpu.matmul %20, %21, %cst_18 {dimension_numbers = #tpu.dot_dimension_numbers<[2], [0], [0, 1], [1], [0, 0, 0, 1, 1, 1], [], []>} : vector<2x16x24xf32>, vector<24x8xf32>, vector<2x16x8xf32> -> vector<2x16x8xf32>
    "tpu.trace_stop"() : () -> ()
    %c0_19 = arith.constant 0 : index
    %c0_20 = arith.constant 0 : index
    %c0_21 = arith.constant 0 : index
    %23 = vector.load %arg4[%c0_19, %c0_20, %c0_21] : memref<1x16x8xf32, #tpu.memory_space<vmem>>, vector<1x16x8xf32>
    %24 = vector.broadcast %23 : vector<1x16x8xf32> to vector<2x16x8xf32>
    %25 = arith.addf %22, %24 : vector<2x16x8xf32>
    %cst_22 = arith.constant 0.000000e+00 : f32
    %26 = vector.broadcast %cst_22 : f32 to vector<2x16x8xf32>
    %27 = arith.maximumf %25, %26 : vector<2x16x8xf32>
    %28 = vector.extract_strided_slice %27 {offsets = [0, 0, 0], sizes = [2, 1, 8], strides = [1, 1, 1]} : vector<2x16x8xf32> to vector<2x1x8xf32>
    %29 = vector.extract_strided_slice %27 {offsets = [0, 1, 0], sizes = [2, 1, 8], strides = [1, 1, 1]} : vector<2x16x8xf32> to vector<2x1x8xf32>
    %30 = vector.extract_strided_slice %27 {offsets = [0, 2, 0], sizes = [2, 1, 8], strides = [1, 1, 1]} : vector<2x16x8xf32> to vector<2x1x8xf32>
    %31 = vector.extract_strided_slice %27 {offsets = [0, 3, 0], sizes = [2, 1, 8], strides = [1, 1, 1]} : vector<2x16x8xf32> to vector<2x1x8xf32>
    %32 = vector.extract_strided_slice %27 {offsets = [0, 4, 0], sizes = [2, 1, 8], strides = [1, 1, 1]} : vector<2x16x8xf32> to vector<2x1x8xf32>
    %33 = vector.extract_strided_slice %27 {offsets = [0, 5, 0], sizes = [2, 1, 8], strides = [1, 1, 1]} : vector<2x16x8xf32> to vector<2x1x8xf32>
    %34 = vector.extract_strided_slice %27 {offsets = [0, 6, 0], sizes = [2, 1, 8], strides = [1, 1, 1]} : vector<2x16x8xf32> to vector<2x1x8xf32>
    %35 = vector.extract_strided_slice %27 {offsets = [0, 7, 0], sizes = [2, 1, 8], strides = [1, 1, 1]} : vector<2x16x8xf32> to vector<2x1x8xf32>
    %36 = vector.extract_strided_slice %27 {offsets = [0, 8, 0], sizes = [2, 1, 8], strides = [1, 1, 1]} : vector<2x16x8xf32> to vector<2x1x8xf32>
    %37 = vector.extract_strided_slice %27 {offsets = [0, 9, 0], sizes = [2, 1, 8], strides = [1, 1, 1]} : vector<2x16x8xf32> to vector<2x1x8xf32>
    %38 = vector.extract_strided_slice %27 {offsets = [0, 10, 0], sizes = [2, 1, 8], strides = [1, 1, 1]} : vector<2x16x8xf32> to vector<2x1x8xf32>
    %39 = vector.extract_strided_slice %27 {offsets = [0, 11, 0], sizes = [2, 1, 8], strides = [1, 1, 1]} : vector<2x16x8xf32> to vector<2x1x8xf32>
    %40 = vector.extract_strided_slice %27 {offsets = [0, 12, 0], sizes = [2, 1, 8], strides = [1, 1, 1]} : vector<2x16x8xf32> to vector<2x1x8xf32>
    %41 = vector.extract_strided_slice %27 {offsets = [0, 13, 0], sizes = [2, 1, 8], strides = [1, 1, 1]} : vector<2x16x8xf32> to vector<2x1x8xf32>
    %42 = vector.extract_strided_slice %27 {offsets = [0, 14, 0], sizes = [2, 1, 8], strides = [1, 1, 1]} : vector<2x16x8xf32> to vector<2x1x8xf32>
    %43 = vector.extract_strided_slice %27 {offsets = [0, 15, 0], sizes = [2, 1, 8], strides = [1, 1, 1]} : vector<2x16x8xf32> to vector<2x1x8xf32>
    %44 = tpu.concatenate %28, %29, %30, %31, %32, %33, %34, %35, %36, %37, %38, %39, %40, %41, %42, %43 in 2 : vector<2x1x8xf32>, vector<2x1x8xf32>, vector<2x1x8xf32>, vector<2x1x8xf32>, vector<2x1x8xf32>, vector<2x1x8xf32>, vector<2x1x8xf32>, vector<2x1x8xf32>, vector<2x1x8xf32>, vector<2x1x8xf32>, vector<2x1x8xf32>, vector<2x1x8xf32>, vector<2x1x8xf32>, vector<2x1x8xf32>, vector<2x1x8xf32>, vector<2x1x8xf32> -> vector<2x1x128xf32>
    %c0_23 = arith.constant 0 : index
    %c0_24 = arith.constant 0 : index
    %45 = vector.load %arg5[%c0_23, %c0_24] : memref<128x32xf32, #tpu.memory_space<vmem>>, vector<128x32xf32>
    "tpu.trace_start"() <{level = 10 : i32, message = "bxf,fo->bxo"}> : () -> ()
    %cst_25 = arith.constant dense<0.000000e+00> : vector<2x1x32xf32>
    %46 = tpu.matmul %44, %45, %cst_25 {dimension_numbers = #tpu.dot_dimension_numbers<[2], [0], [0, 1], [1], [0, 0, 0, 1, 1, 1], [], []>} : vector<2x1x128xf32>, vector<128x32xf32>, vector<2x1x32xf32> -> vector<2x1x32xf32>
    "tpu.trace_stop"() : () -> ()
    %c0_26 = arith.constant 0 : index
    %c0_27 = arith.constant 0 : index
    %47 = vector.load %arg6[%c0_26, %c0_27] : memref<1x32xf32, #tpu.memory_space<vmem>>, vector<1x32xf32>
    %48 = vector.shape_cast %47 : vector<1x32xf32> to vector<1x1x32xf32>
    %49 = vector.broadcast %48 : vector<1x1x32xf32> to vector<2x1x32xf32>
    %50 = arith.addf %46, %49 : vector<2x1x32xf32>
    %cst_28 = arith.constant 0.000000e+00 : f32
    %51 = vector.broadcast %cst_28 : f32 to vector<2x1x32xf32>
    %52 = arith.maximumf %50, %51 : vector<2x1x32xf32>
    %c0_29 = arith.constant 0 : index
    %c0_30 = arith.constant 0 : index
    %53 = vector.load %arg7[%c0_29, %c0_30] : memref<32x5xf32, #tpu.memory_space<vmem>>, vector<32x5xf32>
    "tpu.trace_start"() <{level = 10 : i32, message = "bxf,fo->bxo"}> : () -> ()
    %cst_31 = arith.constant dense<0.000000e+00> : vector<2x1x5xf32>
    %54 = tpu.matmul %52, %53, %cst_31 {dimension_numbers = #tpu.dot_dimension_numbers<[2], [0], [0, 1], [1], [0, 0, 0, 1, 1, 1], [], []>} : vector<2x1x32xf32>, vector<32x5xf32>, vector<2x1x5xf32> -> vector<2x1x5xf32>
    "tpu.trace_stop"() : () -> ()
    %c0_32 = arith.constant 0 : index
    %c0_33 = arith.constant 0 : index
    %55 = vector.load %arg8[%c0_32, %c0_33] : memref<1x5xf32, #tpu.memory_space<vmem>>, vector<1x5xf32>
    %56 = vector.shape_cast %55 : vector<1x5xf32> to vector<1x1x5xf32>
    %57 = vector.broadcast %56 : vector<1x1x5xf32> to vector<2x1x5xf32>
    %58 = arith.addf %54, %57 : vector<2x1x5xf32>
    %cst_34 = arith.constant dense<0xFF800000> : vector<1x5xf32>
    %59 = vector.multi_reduction <maximumf>, %58, %cst_34 [0] : vector<2x1x5xf32> to vector<1x5xf32>
    %60 = vector.shape_cast %59 : vector<1x5xf32> to vector<1x1x5xf32>
    %61 = vector.broadcast %60 : vector<1x1x5xf32> to vector<2x1x5xf32>
    %62 = arith.subf %58, %61 : vector<2x1x5xf32>
    %63 = math.exp %62 : vector<2x1x5xf32>
    %cst_35 = arith.constant dense<0.000000e+00> : vector<1x5xf32>
    %64 = vector.multi_reduction <add>, %63, %cst_35 [0] : vector<2x1x5xf32> to vector<1x5xf32>
    %65 = vector.shape_cast %64 : vector<1x5xf32> to vector<1x1x5xf32>
    %66 = vector.broadcast %65 : vector<1x1x5xf32> to vector<2x1x5xf32>
    %67 = arith.divf %63, %66 : vector<2x1x5xf32>
    %c0_36 = arith.constant 0 : index
    %c0_37 = arith.constant 0 : index
    %c0_38 = arith.constant 0 : index
    %68 = vector.load %arg9[%c0_36, %c0_37, %c0_38] : memref<2x1x5xf32, #tpu.memory_space<vmem>>, vector<2x1x5xf32>
    tpu.vector_store %arg9[%c0_36, %c0_37, %c0_38], %67 {strides = array<i32>} : memref<2x1x5xf32, #tpu.memory_space<vmem>>, vector<2x1x5xf32>,
    return
  }
}

</mosaic_0001>

<bundles_post_ra>
// kernel: tpu_custom_call.1
= control target key start
LH: loop header
LB: loop body
LE: loop exit
PB: predicated region body
PF: predicated region fallthrough
CT: control target
= control target key end

     0   :  { %vm68_vm0 = vcmask 1045504   ;;  %vm45_vm1 = vcmask 1046528   ;;  %s1153_s25 = smov 8   ;;  %s1154_s26 = smov 4   ;;  %s1512_s0 = inlined_call_operand.vmem [shape: f32[2,18,4], index: 0, kind: input, shape index: {}]   ;;  %s1513_s1 = inlined_call_operand.vmem [shape: f32[12,8], index: 1, kind: input, shape index: {}]   ;;  %s1514_s2 = inlined_call_operand.vmem [shape: f32[1,8], index: 2, kind: input, shape index: {}]   ;;  %s1515_s3 = inlined_call_operand.vmem [shape: f32[24,8], index: 3, kind: input, shape index: {}]   ;;  %s1516_s4 = inlined_call_operand.vmem [shape: f32[1,16,8], index: 4, kind: input, shape index: {}]   ;;  %s1517_s5 = inlined_call_operand.vmem [shape: f32[128,32], index: 5, kind: input, shape index: {}]   ;;  %s1518_s6 = inlined_call_operand.vmem [shape: f32[1,32], index: 6, kind: input, shape index: {}]   ;;  %s1519_s7 = inlined_call_operand.vmem [shape: f32[32,5], index: 7, kind: input, shape index: {}]   ;;  %s1520_s8 = inlined_call_operand.vmem [shape: f32[1,5], index: 8, kind: input, shape index: {}]   ;;  %s1521_s9 = inlined_call_operand.hbm [shape: f32[2,1,5], index: 9, kind: output, shape index: {}]  }
   0x1   :  { %v33_v0 = vld [vmem:[%s1512_s0] sm:$0xff]  ;;  %v34_v1 = vld [vmem:[%s1512_s0 + $0x8] sm:$0xff]  ;;  %v35_v6 = vld [vmem:[%s1512_s0 + $0x10] sm:$0x3] }
   0x2   :  { %v69_v2 = vrot.slane %v33_v0, 2  ;;  %v70_v3 = vrot.slane %v34_v1, 2  ;;  %v46_v4 = vrot.slane %v33_v0, 1  ;;  %v47_v5 = vrot.slane %v34_v1, 1  ;;  %v37_v9 = vld [vmem:[%s1512_s0 + $0x20] sm:$0xff]  ;;  %v36_v11 = vld [vmem:[%s1512_s0 + $0x18] sm:$0xff] }
   0x3   :  { %v72_v7 = vrot.slane %v35_v6, 2  ;;  %v49_v8 = vrot.slane %v35_v6, 1  ;;  %v38_v10 = vld [vmem:[%s1512_s0 + $0x28] sm:$0x3]  ;;  %v101_v14 = vld [vmem:[%s1513_s1] sm:$0xff]  ;;  %v52_v16 = vrot.slane %v37_v9, 1 }
   0x4   :  { %v71_v12 = vsel %vm68_vm0, %v69_v2, %v70_v3  ;;  %v48_v13 = vsel %vm45_vm1, %v46_v4, %v47_v5  ;;  %v102_v15 = vld [vmem:[%s1513_s1 + $0x8] sm:$0xf]  ;;  %v54_v19 = vrot.slane %v38_v10, 1  ;;  %v51_v20 = vrot.slane %v36_v11, 1 }
   0x5   :  { %79 = vrot.lane.b32.xlu1 %v71_v12, %s1153_s25  ;;  %56 = vrot.lane.b32.xlu0 %v48_v13, %s1154_s26  ;;  %v73_v17 = vsel %vm68_vm0, %v70_v3, %v72_v7  ;;  %v50_v18 = vsel %vm45_vm1, %v47_v5, %v49_v8 }
   0x6   :  { %14 = vsyncpa [#allocation4], 0  ;;  %vm123_vm2 = vcmask 1043456   ;;  %v988_v21 = vpack.c.bf16 %v102_v15, %v101_v14  ;;  %vm1155_vm3 = vmmov 1   ;;  %v75_v22 = vrot.slane %v37_v9, 2  ;;  %v292_v50 = vld [vmem:[%s1515_s3] sm:$0xff] }
   0x7   :  { %vm989_vm4 = vmpackc.low %vm123_vm2, %vm1155_vm3  ;;  %v55_v23 = vsel %vm45_vm1, %v52_v16, %v54_v19  ;;  %v53_v24 = vsel %vm45_vm1, %v51_v20, %v52_v16  ;;  %v77_v25 = vrot.slane %v38_v10, 2  ;;  %v74_v26 = vrot.slane %v36_v11, 2  ;;  %v874_v46 = vld [vmem:[%s1514_s2] ss:$0 sm:$0xff]  ;;  %v293_v51 = vld [vmem:[%s1515_s3 + $0x8] sm:$0xff]  ;;  %s1160_s1 = smov 72  }
   0x8   :  { %990 = vmatprep.subr.msk.bf16.mxu1 %vm989_vm4, %v988_v21  ;;  %vm91_vm5 = vcmask 31744   ;;  %vm96_vm6 = vcmask 64512   ;;  %vm110_vm7 = vcmask 97280   ;;  %vm218_vm8 = vcmask 58368   ;;  %v294_v56 = vld [vmem:[%s1515_s3 + $0x10] sm:$0xff]  ;;  %s1157_s3 = smov 16  }
   0x9   :  { %81 = vrot.lane.b32.xlu1 %v73_v17, %s1153_s25  ;;  %58 = vrot.lane.b32.xlu0 %v50_v18, %s1154_s26  ;;  %v78_v27 = vsel %vm68_vm0, %v75_v22, %v77_v25  ;;  %v76_v28 = vsel %vm68_vm0, %v74_v26, %v75_v22  ;;  %v1156_v45 = vmov 0.0   ;;  %v994_v53 = vpack.c.bf16 %v293_v51, %v292_v50  ;;  %s1161_s2 = smov 80   ;;  %s1162_s10 = smov 88  }
   0xa   :  { %993 = vmatpush3.bf16.msk.msra.mxu1 %vm989_vm4, %v988_v21  ;;  %217 = vst.msk [vmem:[#allocation2 + $0x8] sm:$0xff] %vm96_vm6, %v1156_v45  ;;  %216 = vst.msk [vmem:[#allocation2] sm:$0xff] %vm96_vm6, %v1156_v45  ;;  %vm287_vm9 = vcmask 130048   ;;  %vm297_vm10 = vcmask 195584   ;;  %s1163_s15 = smov 32   ;;  %s1164_s19 = smov 24  }
   0xb   :  { %219 = vst.msk [vmem:[#allocation2 + $0x10] sm:$0x3] %vm218_vm8, %v1156_v45  ;;  %222 = vst.msk [vmem:[#allocation2 + $0x28] sm:$0x3] %vm218_vm8, %v1156_v45  ;;  %995 = vmatprep.subr.bf16.mxu1 %v994_v53  ;;  %s1165_s20 = smov 48   ;;  %s1166_s21 = smov 40  }
   0xc   :  { %220 = vst.msk [vmem:[#allocation2 + $0x18] sm:$0xff] %vm96_vm6, %v1156_v45  ;;  %221 = vst.msk [vmem:[#allocation2 + $0x20] sm:$0xff] %vm96_vm6, %v1156_v45  ;;  %vm1168_vm11 = vmmov 0   ;;  %s1169_s29 = smov 56   ;;  %s1170_s30 = smov 112   ;;  %vm527_vm12 = vcmask 261120  }
   0xd   :  { %62 = vrot.lane.b32.xlu1 %v55_v23, %s1154_s26  ;;  %60 = vrot.lane.b32.xlu0 %v53_v24, %s1154_s26  ;;  %s1167_s26 = smov 96   ;;  %vm530_vm13 = vcmask 326656   ;;  %vm533_vm14 = vcmask 392192   ;;  %vm536_vm15 = vcmask 457728   ;;  %vm545_vm2 = vcmask 654336  }
   0xe   :  { %974 = vmatprep.mubr.msk.f32.mxu0 %vm1168_vm11, %v1156_v45  ;;  %vm548_vm3 = vcmask 719872   ;;  %vm551_vm4 = vcmask 785408   ;;  %vm583_vm8 = vcmask 1041409  }
  0x11   :  { %85 = vrot.lane.b32.xlu1 %v78_v27, %s1153_s25  ;;  %83 = vrot.lane.b32.xlu0 %v76_v28, %s1153_s25 }
  0x77   :  { %v80_v29 = vpop.permute.xlu1 %79  ;;  %v57_v30 = vpop.permute.xlu0 %56 }
  0x78   :  { %v92_v31 = vsel %vm91_vm5, %v33_v0, %v57_v30 }
  0x79   :  { %v97_v32 = vsel %vm96_vm6, %v92_v31, %v80_v29 }
  0x7a   :  { %924 = vmatprep.mubr.msk.f32.mxu1 %vm110_vm7, %v97_v32 }
  0x7b   :  { %v82_v33 = vpop.permute.xlu1 %81  ;;  %v59_v34 = vpop.permute.xlu0 %58 }
  0x7c   :  { %v93_v35 = vsel %vm91_vm5, %v34_v1, %v59_v34 }
  0x7d   :  { %v98_v36 = vsel %vm96_vm6, %v93_v35, %v82_v33 }
  0x7e   :  { %925 = vmatmul.mubr.msk.f32.vlgmr.msra.gmra.mrb[0].mxu1 %vm110_vm7, %v98_v36 }
  0x7f   :  { %v63_v37 = vpop.permute.xlu1 %62  ;;  %v61_v38 = vpop.permute.xlu0 %60  ;;  %997 = vmatpush3.bf16.msra.mxu1 %v994_v53 }
  0x80   :  { %v95_v39 = vsel %vm91_vm5, %v37_v9, %v63_v37  ;;  %v94_v40 = vsel %vm91_vm5, %v36_v11, %v61_v38  ;;  %934 = vmatprep.subr.mxu1 %v294_v56  ;;  %vm554_vm5 = vcmask 850944  }
  0x83   :  { %v86_v41 = vpop.permute.xlu1 %85  ;;  %v84_v42 = vpop.permute.xlu0 %83  ;;  %935 = vmatpush3.msra.mxu1 %v294_v56  ;;  %v565_v56 = vld [vmem:[%s1517_s5 + $0x10] sm:$0xff] }
  0x84   :  { %v100_v43 = vsel %vm96_vm6, %v95_v39, %v86_v41  ;;  %v99_v44 = vsel %vm96_vm6, %v94_v40, %v84_v42  ;;  %v296_v42 = vld [vmem:[%s1516_s4 + $0x8] sm:$0xff] }
  0x85   :  { %927 = vmatprep.mubr.msk.f32.mxu1 %vm110_vm7, %v99_v44 }
  0x86   :  { %928 = vmatmul.mubr.msk.f32.gmra.mrb[2].mxu1 %vm110_vm7, %v100_v43  ;;  %vm560_vm7 = vcmask 982016  }
 0x151   :  { %v926_v47 = vpop.f32.mrb[0].mxu1 }
 0x152   :  { %v199_v48 = vadd.f32 %v926_v47, %v874_v46  ;;  %v193_v49 = vpop.f32.mrb[1].mxu1  ;;  %v564_v47 = vld [vmem:[%s1517_s5 + $0x8] sm:$0xff] }
 0x153   :  { %v194_v52 = vadd.f32 %v874_v46, %v193_v49  ;;  %v295_v49 = vld [vmem:[%s1516_s4] sm:$0xff]  ;;  %s1159_s4 = smov 64  }
 0x154   :  { %v213_v54 = vmax.f32 %v199_v48, 0.0 }
 0x155   :  { %v212_v55 = vmax.f32 %v194_v52, 0.0 }
 0x156   :  { %224 = vst.msk [vmem:[#allocation2 + $0x9] sm:$0xff] %vm96_vm6, %v213_v54  ;;  %v1158_v54 = vmov 0.0|0.0  }
 0x157   :  { %223 = vst.msk [vmem:[#allocation2 + $0x1] sm:$0xff] %vm96_vm6, %v212_v55  ;;  %998 = vmatprep.subr.bf16.mxu0 %v1158_v54  ;;  %1022 = vmatprep.subr.bf16.mxu1 %v1158_v54 }
 0x159   :  { %v929_v57 = vpop.f32.mrb[2].mxu1 }
 0x15a   :  { %v209_v58 = vadd.f32 %v929_v57, %v874_v46  ;;  %v203_v59 = vpop.f32.mrb[3].mxu1  ;;  %v566_v57 = vld [vmem:[%s1517_s5 + $0x18] sm:$0xff] }
 0x15b   :  { %v204_v60 = vadd.f32 %v874_v46, %v203_v59  ;;  %v563_v46 = vld [vmem:[%s1517_s5] sm:$0xff] }
 0x15c   :  { %v215_v61 = vmax.f32 %v209_v58, 0.0  ;;  %v999_v51 = vpack.c.bf16 %v564_v47, %v563_v46 }
 0x15d   :  { %v214_v62 = vmax.f32 %v204_v60, 0.0  ;;  %v229_v63 = vld [vmem:[#allocation2 + $0x10] sm:$0x3]  ;;  %v1002_v60 = vpack.c.bf16 %v566_v57, %v565_v56 }
 0x15e   :  { %226 = vst.msk [vmem:[#allocation2 + $0x21] sm:$0xff] %vm96_vm6, %v215_v61  ;;  %v228_v0 = vld [vmem:[#allocation2 + $0x8] sm:$0xff]  ;;  %v242_v1 = vrot.slane %v229_v63, 1  ;;  %v227_v2 = vld [vmem:[#allocation2] sm:$0xff]  ;;  %v264_v5 = vrot.slane %v229_v63, 2  ;;  %1000 = vmatpush3.bf16.msra.mxu0 %v999_v51  ;;  %v577_v57 = vld [vmem:[%s1517_s5 + $0x70] sm:$0xff] }
 0x15f   :  { %225 = vst.msk [vmem:[#allocation2 + $0x19] sm:$0xff] %vm96_vm6, %v214_v62  ;;  %v240_v3 = vrot.slane %v228_v0, 1  ;;  %v239_v4 = vrot.slane %v227_v2, 1  ;;  %v262_v8 = vrot.slane %v228_v0, 2  ;;  %v261_v9 = vrot.slane %v227_v2, 2  ;;  %1001 = vmatprep.subr.bf16.mxu0 %v1158_v54 }
 0x161   :  { %v243_v6 = vsel %vm45_vm1, %v240_v3, %v242_v1  ;;  %v241_v7 = vsel %vm45_vm1, %v239_v4, %v240_v3  ;;  %v265_v10 = vsel %vm68_vm0, %v262_v8, %v264_v5  ;;  %v263_v11 = vsel %vm68_vm0, %v261_v9, %v262_v8  ;;  %v567_v9 = vld [vmem:[%s1517_s5 + $0x20] sm:$0xff] }
 0x162   :  { %251 = vrot.lane.b32.xlu1 %v243_v6, %s1153_s25  ;;  %249 = vrot.lane.b32.xlu0 %v241_v7, %s1153_s25 }
 0x163   :  { %1003 = vmatpush3.bf16.msra.mxu0 %v1002_v60 }
 0x164   :  { %1004 = vmatprep.subr.bf16.mxu0 %v1158_v54 }
 0x165   :  { %v232_v12 = vld [vmem:[#allocation2 + $0x28] sm:$0x3] }
 0x166   :  { %273 = vrot.lane.b32.xlu1 %v265_v10, %s1157_s3  ;;  %271 = vrot.lane.b32.xlu0 %v263_v11, %s1157_s3  ;;  %v231_v13 = vld [vmem:[#allocation2 + $0x20] sm:$0xff]  ;;  %v247_v14 = vrot.slane %v232_v12, 1  ;;  %v230_v15 = vld [vmem:[#allocation2 + $0x18] sm:$0xff]  ;;  %v269_v18 = vrot.slane %v232_v12, 2  ;;  %v568_v10 = vld [vmem:[%s1517_s5 + $0x28] sm:$0xff] }
 0x167   :  { %v245_v16 = vrot.slane %v231_v13, 1  ;;  %v244_v17 = vrot.slane %v230_v15, 1  ;;  %v267_v21 = vrot.slane %v231_v13, 2  ;;  %v266_v22 = vrot.slane %v230_v15, 2 }
 0x169   :  { %v248_v19 = vsel %vm45_vm1, %v245_v16, %v247_v14  ;;  %v246_v20 = vsel %vm45_vm1, %v244_v17, %v245_v16  ;;  %v270_v23 = vsel %vm68_vm0, %v267_v21, %v269_v18  ;;  %v268_v24 = vsel %vm68_vm0, %v266_v22, %v267_v21 }
 0x16a   :  { %255 = vrot.lane.b32.xlu1 %v248_v19, %s1153_s25  ;;  %253 = vrot.lane.b32.xlu0 %v246_v20, %s1153_s25  ;;  %v1005_v18 = vpack.c.bf16 %v568_v10, %v567_v9  ;;  %v569_v19 = vld [vmem:[%s1517_s5 + $0x30] sm:$0xff]  ;;  %v570_v20 = vld [vmem:[%s1517_s5 + $0x38] sm:$0xff]  ;;  %vm539_vm0 = vcmask 523264   ;;  %vm542_vm1 = vcmask 588800  }
 0x16c   :  { %1006 = vmatpush3.bf16.msra.mxu0 %v1005_v18 }
 0x16d   :  { %1007 = vmatprep.subr.bf16.mxu0 %v1158_v54 }
 0x16e   :  { %277 = vrot.lane.b32.xlu1 %v270_v23, %s1157_s3  ;;  %275 = vrot.lane.b32.xlu0 %v268_v24, %s1157_s3 }
 0x1d4   :  { %v252_v25 = vpop.permute.xlu1 %251  ;;  %v250_v26 = vpop.permute.xlu0 %249 }
 0x1d5   :  { %v284_v27 = vsel %vm96_vm6, %v228_v0, %v252_v25  ;;  %v283_v28 = vsel %vm96_vm6, %v227_v2, %v250_v26  ;;  %v1008_v26 = vpack.c.bf16 %v570_v20, %v569_v19 }
 0x1d7   :  { %1009 = vmatpush3.bf16.msra.mxu0 %v1008_v26 }
 0x1d8   :  { %v274_v29 = vpop.permute.xlu1 %273  ;;  %v272_v30 = vpop.permute.xlu0 %271  ;;  %1010 = vmatprep.subr.bf16.mxu0 %v1158_v54 }
 0x1d9   :  { %v289_v31 = vsel %vm287_vm9, %v284_v27, %v274_v29  ;;  %v288_v32 = vsel %vm287_vm9, %v283_v28, %v272_v30  ;;  %v571_v30 = vld [vmem:[%s1517_s5 + $0x40] sm:$0xff] }
 0x1da   :  { %936 = vmatprep.mubr.msk.f32.mxu1 %vm297_vm10, %v288_v32 }
 0x1db   :  { %937 = vmatmul.mubr.msk.f32.vlgmr.msra.gmra.mrb[4].mxu1 %vm297_vm10, %v289_v31  ;;  %v572_v31 = vld [vmem:[%s1517_s5 + $0x48] sm:$0xff] }
 0x1dc   :  { %v256_v33 = vpop.permute.xlu1 %255  ;;  %v254_v34 = vpop.permute.xlu0 %253 }
 0x1dd   :  { %v286_v35 = vsel %vm96_vm6, %v231_v13, %v256_v33  ;;  %v285_v36 = vsel %vm96_vm6, %v230_v15, %v254_v34 }
 0x1e0   :  { %v278_v37 = vpop.permute.xlu1 %277  ;;  %v276_v38 = vpop.permute.xlu0 %275 }
 0x1e1   :  { %v291_v39 = vsel %vm287_vm9, %v286_v35, %v278_v37  ;;  %v290_v40 = vsel %vm287_vm9, %v285_v36, %v276_v38  ;;  %v1011_v35 = vpack.c.bf16 %v572_v31, %v571_v30 }
 0x1e2   :  { %939 = vmatprep.mubr.msk.f32.mxu1 %vm297_vm10, %v290_v40 }
 0x1e3   :  { %940 = vmatmul.mubr.msk.f32.gmra.mrb[6].mxu1 %vm297_vm10, %v291_v39  ;;  %1012 = vmatpush3.bf16.msra.mxu0 %v1011_v35 }
 0x1e4   :  { %1013 = vmatprep.subr.bf16.mxu0 %v1158_v54  ;;  %985 = vmatprep.mubr.msk.f32.mxu1 %vm1168_vm11, %v1156_v45 }
 0x2ae   :  { %v938_v41 = vpop.f32.mrb[4].mxu1 }
 0x2af   :  { %v376_v43 = vpop.f32.mrb[5].mxu1  ;;  %v382_v44 = vadd.f32 %v938_v41, %v296_v42 }
 0x2b0   :  { %v377_v58 = vadd.f32 %v376_v43, %v295_v49  ;;  %v574_v43 = vld [vmem:[%s1517_s5 + $0x58] sm:$0xff] }
 0x2b1   :  { %v1337_v48 = vmax.f32 %v382_v44, 0.0 }
 0x2b2   :  { %v1363_v5 = vmax.f32 %v377_v58, 0.0  ;;  %v578_v58 = vld [vmem:[%s1517_s5 + $0x78] sm:$0xff] }
 0x2b3   :  { %v465_v62 = vrot.slane %v1337_v48, 1  ;;  %v473_v63 = vrot.slane %v1337_v48, 2  ;;  %v481_v0 = vrot.slane %v1337_v48, 3  ;;  %v489_v12 = vrot.slane %v1337_v48, 4 }
 0x2b4   :  { %v505_v14 = vrot.slane %v1337_v48, 6  ;;  %v497_v16 = vrot.slane %v1337_v48, 5  ;;  %v409_v21 = vrot.slane %v1363_v5, 2  ;;  %v401_v28 = vrot.slane %v1363_v5, 1 }
 0x2b5   :  { %v425_v33 = vrot.slane %v1363_v5, 4  ;;  %v417_v37 = vrot.slane %v1363_v5, 3  ;;  %v441_v40 = vrot.slane %v1363_v5, 6  ;;  %v433_v46 = vrot.slane %v1363_v5, 5 }
 0x2b6   :  { %v941_v50 = vpop.f32.mrb[6].mxu1  ;;  %v449_v51 = vrot.slane %v1363_v5, 7  ;;  %v1020_v60 = vpack.c.bf16 %v578_v58, %v577_v57 }
 0x2b7   :  { %v392_v52 = vadd.f32 %v941_v50, %v296_v42  ;;  %v386_v53 = vpop.f32.mrb[7].mxu1  ;;  %v573_v42 = vld [vmem:[%s1517_s5 + $0x50] sm:$0xff] }
 0x2b8   :  { %v387_v55 = vadd.f32 %v386_v53, %v295_v49  ;;  %v1014_v47 = vpack.c.bf16 %v574_v43, %v573_v42  ;;  %v576_v53 = vld [vmem:[%s1517_s5 + $0x68] sm:$0xff] }
 0x2b9   :  { %v1350_v59 = vmax.f32 %v392_v52, 0.0  ;;  %v575_v52 = vld [vmem:[%s1517_s5 + $0x60] sm:$0xff]  ;;  %s1172_s5 = smov 120  }
 0x2ba   :  { %v1353_v61 = vmax.f32 %v387_v55, 0.0  ;;  %1015 = vmatpush3.bf16.msra.mxu0 %v1014_v47  ;;  %v1017_v55 = vpack.c.bf16 %v576_v53, %v575_v52 }
 0x2bb   :  { %v1051_v1 = vpack.i.bf16 %v1337_v48, %v1350_v59  ;;  %v466_v2 = vrot.slane %v1350_v59, 1  ;;  %v474_v3 = vrot.slane %v1350_v59, 2  ;;  %v482_v4 = vrot.slane %v1350_v59, 3  ;;  %1016 = vmatprep.subr.bf16.mxu0 %v1158_v54 }
 0x2bc   :  { %v410_v11 = vrot.slane %v1353_v61, 2  ;;  %v490_v13 = vrot.slane %v1350_v59, 4  ;;  %v506_v15 = vrot.slane %v1350_v59, 6  ;;  %v498_v17 = vrot.slane %v1350_v59, 5 }
 0x2bd   :  { %1052 = vrot.lane.b32.xlu1 %v1051_v1, %s1159_s4  ;;  %v1056_v6 = vpack.i.bf16 %v465_v62, %v466_v2  ;;  %v1061_v7 = vpack.i.bf16 %v473_v63, %v474_v3  ;;  %v1066_v8 = vpack.i.bf16 %v481_v0, %v482_v4  ;;  %v402_v22 = vrot.slane %v1353_v61, 1 }
 0x2be   :  { %v1101_v23 = vpack.i.bf16 %v489_v12, %v490_v13  ;;  %v1116_v24 = vpack.i.bf16 %v505_v14, %v506_v15  ;;  %v1387_v25 = vpack.i.bf16 %v497_v16, %v498_v17  ;;  %v1076_v27 = vpack.i.bf16 %v409_v21, %v410_v11  ;;  %1018 = vmatpush3.bf16.msra.mxu0 %v1017_v55 }
 0x2bf   :  { %1057 = vrot.lane.b32.xlu0 %v1056_v6, %s1160_s1  ;;  %v426_v29 = vrot.slane %v1353_v61, 4  ;;  %v1071_v32 = vpack.i.bf16 %v401_v28, %v402_v22  ;;  %v418_v34 = vrot.slane %v1353_v61, 3  ;;  %v442_v38 = vrot.slane %v1353_v61, 6  ;;  %1019 = vmatprep.subr.bf16.mxu0 %v1158_v54 }
 0x2c0   :  { %v434_v41 = vrot.slane %v1353_v61, 5  ;;  %v450_v50 = vrot.slane %v1353_v61, 7  ;;  %v513_v62 = vrot.slane %v1337_v48, 7  ;;  %v514_v63 = vrot.slane %v1350_v59, 7 }
 0x2c1   :  { %1062 = vrot.lane.b32.xlu1 %v1061_v7, %s1161_s2  ;;  %v1086_v36 = vpack.i.bf16 %v425_v33, %v426_v29  ;;  %v1081_v39 = vpack.i.bf16 %v417_v37, %v418_v34  ;;  %v1096_v44 = vpack.i.bf16 %v441_v40, %v442_v38  ;;  %s1171_s2 = smov 104  }
 0x2c2   :  { %v1091_v49 = vpack.i.bf16 %v433_v46, %v434_v41  ;;  %v1106_v56 = vpack.i.bf16 %v449_v51, %v450_v50  ;;  %1021 = vmatpush3.bf16.msra.mxu0 %v1020_v60 }
 0x2c3   :  { %1067 = vrot.lane.b32.xlu0 %v1066_v8, %s1162_s10 }
 0x2c5   :  { %1077 = vrot.lane.b32.xlu1 %v1076_v27, %s1157_s3 }
 0x2c7   :  { %1072 = vrot.lane.b32.xlu0 %v1071_v32, %s1153_s25 }
 0x2c9   :  { %1087 = vrot.lane.b32.xlu1 %v1086_v36, %s1163_s15 }
 0x2cb   :  { %1082 = vrot.lane.b32.xlu0 %v1081_v39, %s1164_s19 }
 0x2cd   :  { %1097 = vrot.lane.b32.xlu1 %v1096_v44, %s1165_s20 }
 0x2cf   :  { %1092 = vrot.lane.b32.xlu0 %v1091_v49, %s1166_s21 }
 0x2d1   :  { %1102 = vrot.lane.b32.xlu1 %v1101_v23, %s1167_s26 }
 0x2d3   :  { %1107 = vrot.lane.b32.xlu0 %v1106_v56, %s1169_s29 }
 0x2d5   :  { %1117 = vrot.lane.b32.xlu1 %v1116_v24, %s1170_s30 }
 0x2d7   :  { %1112 = vrot.lane.b32.xlu0 %v1387_v25, %s1171_s2 }
 0x2d9   :  { %515 = vrot.lane.b32.xlu1 %v513_v62, %s1172_s5 }
 0x2db   :  { %517 = vrot.lane.b32.xlu0 %v514_v63, %s1172_s5 }
 0x32f   :  { %v1053_v0 = vpop.permute.xlu1 %1052 }
 0x330   :  { %v1055_v32 = vunpack.i.h.bf16 %v1053_v0  ;;  %v1054_v33 = vunpack.i.l.bf16 %v1053_v0 }
 0x331   :  { %v1436_v1 = vpop.permute.xlu0 %1057 }
 0x332   :  { %v1060_v36 = vunpack.i.h.bf16 %v1436_v1  ;;  %v1059_v37 = vunpack.i.l.bf16 %v1436_v1 }
 0x333   :  { %v1438_v2 = vpop.permute.xlu1 %1062 }
 0x334   :  { %v1065_v40 = vunpack.i.h.bf16 %v1438_v2  ;;  %v1064_v41 = vunpack.i.l.bf16 %v1438_v2 }
 0x335   :  { %v1440_v3 = vpop.permute.xlu0 %1067 }
 0x336   :  { %v1070_v46 = vunpack.i.h.bf16 %v1440_v3  ;;  %v1069_v47 = vunpack.i.l.bf16 %v1440_v3 }
 0x337   :  { %v1078_v45 = vpop.permute.xlu1 %1077 }
 0x338   :  { %v1080_v59 = vunpack.i.h.bf16 %v1078_v45  ;;  %v1079_v10 = vunpack.i.l.bf16 %v1078_v45 }
 0x339   :  { %v1073_v4 = vpop.permute.xlu0 %1072 }
 0x33a   :  { %v1075_v6 = vunpack.i.h.bf16 %v1073_v4  ;;  %v1074_v7 = vunpack.i.l.bf16 %v1073_v4 }
 0x33b   :  { %v1088_v8 = vpop.permute.xlu1 %1087 }
 0x33c   :  { %v521_v48 = vsel %vm96_vm6, %v1363_v5, %v1075_v6  ;;  %v522_v9 = vsel %vm96_vm6, %v1353_v61, %v1074_v7  ;;  %v1090_v19 = vunpack.i.h.bf16 %v1088_v8  ;;  %v1089_v5 = vunpack.i.l.bf16 %v1088_v8 }
 0x33d   :  { %v1083_v11 = vpop.permute.xlu0 %1082  ;;  %v523_v14 = vsel %vm287_vm9, %v521_v48, %v1080_v59  ;;  %v524_v15 = vsel %vm287_vm9, %v522_v9, %v1079_v10  ;;  %vm557_vm6 = vcmask 916480  }
 0x33e   :  { %v1085_v12 = vunpack.i.h.bf16 %v1083_v11  ;;  %v1084_v13 = vunpack.i.l.bf16 %v1083_v11  ;;  %v700_v11 = vld [vmem:[%s1519_s7] sm:$0xff] }
 0x33f   :  { %v1098_v16 = vpop.permute.xlu1 %1097 }
 0x340   :  { %v525_v17 = vsel %vm297_vm10, %v523_v14, %v1085_v12  ;;  %v526_v18 = vsel %vm297_vm10, %v524_v15, %v1084_v13  ;;  %v1100_v27 = vunpack.i.h.bf16 %v1098_v16  ;;  %v1099_v28 = vunpack.i.l.bf16 %v1098_v16  ;;  %v701_v12 = vld [vmem:[%s1519_s7 + $0x8] sm:$0xff]  ;;  %v702_v14 = vld [vmem:[%s1519_s7 + $0x10] sm:$0xff]  ;;  %v703_v15 = vld [vmem:[%s1519_s7 + $0x18] sm:$0xff] }
 0x341   :  { %v1093_v20 = vpop.permute.xlu0 %1092  ;;  %v528_v22 = vsel %vm527_vm12, %v525_v17, %v1090_v19  ;;  %v529_v23 = vsel %vm527_vm12, %v526_v18, %v1089_v5  ;;  %v1023_v13 = vpack.c.bf16 %v701_v12, %v700_v11  ;;  %v1026_v16 = vpack.c.bf16 %v703_v15, %v702_v14 }
 0x342   :  { %v1095_v61 = vunpack.i.h.bf16 %v1093_v20  ;;  %v1094_v21 = vunpack.i.l.bf16 %v1093_v20  ;;  %v1173_v17 = vmov 1966171168   ;;  %v591_v19 = vlaneseq }
 0x343   :  { %v1103_v26 = vpop.permute.xlu1 %1102  ;;  %1024 = vmatpush3.bf16.msra.mxu1 %v1023_v13  ;;  %v589_v18 = vunpack.c.l.s4 %v1173_v17  ;;  %vm849_vm10 = vcmask 32768  }
 0x344   :  { %v531_v24 = vsel %vm530_vm13, %v528_v22, %v1095_v61  ;;  %v532_v25 = vsel %vm530_vm13, %v529_v23, %v1094_v21  ;;  %v1105_v52 = vunpack.i.h.bf16 %v1103_v26  ;;  %v1104_v53 = vunpack.i.l.bf16 %v1103_v26  ;;  %1025 = vmatprep.subr.bf16.mxu1 %v1158_v54  ;;  %v1121_v61 = vld [vmem:[%s1518_s6] ss:$0 sps:$4 sm:$0x11]   ;;  %s1174_s6 = smov [#allocation3]  }
 0x345   :  { %v1108_v29 = vpop.permute.xlu0 %1107  ;;  %v534_v34 = vsel %vm533_vm14, %v531_v24, %v1100_v27  ;;  %v535_v35 = vsel %vm533_vm14, %v532_v25, %v1099_v28  ;;  %v590_v5 = vunpack.c.0.s8 %v589_v18  ;;  %v592_v20 = vshrl.u32 %v591_v19, 7 }
 0x346   :  { %v1110_v30 = vunpack.i.h.bf16 %v1108_v29  ;;  %v1109_v31 = vunpack.i.l.bf16 %v1108_v29  ;;  %vm838_vm9 = vcmp.lt.s32.totalorder %v591_v19, 5 }
 0x347   :  { %v1118_v51 = vpop.permute.xlu1 %1117  ;;  %1027 = vmatpush3.bf16.msra.mxu1 %v1026_v16  ;;  %v593_v21 = vsub.s32 %v590_v5, %v592_v20 }
 0x348   :  { %v537_v38 = vsel %vm536_vm15, %v534_v34, %v1110_v30  ;;  %v538_v39 = vsel %vm536_vm15, %v535_v35, %v1109_v31  ;;  %v1120_v63 = vunpack.i.h.bf16 %v1118_v51  ;;  %v1119_v0 = vunpack.i.l.bf16 %v1118_v51  ;;  %v1122_v35 = vld [vmem:[%s1520_s8] ss:$0 sps:$4 sm:$0x11]   ;;  %s863_s8 = sshll.u32 %s1174_s6, 4  ;;  %s864_s8 = int_to_ptr.vmem [resolvable:$true] %s863_s8 }
 0x349   :  { %v540_v42 = vsel %vm539_vm0, %v537_v38, %v1055_v32  ;;  %v541_v43 = vsel %vm539_vm0, %v538_v39, %v1054_v33  ;;  %v1113_v44 = vpop.permute.xlu0 %1112  ;;  %v594_v22 = vrot.slane %v1121_v61, %v593_v21  ;;  %s1129_s20 = scalar_lea.vmem %s864_s8, 32  ;;  %p1134_p1 = scmp.lt.s32.totalorder %s864_s8, %s864_s8 }
 0x34a   :  { %v543_v49 = vsel %vm542_vm1, %v540_v42, %v1060_v36  ;;  %v544_v50 = vsel %vm542_vm1, %v541_v43, %v1059_v37  ;;  %v1115_v57 = vunpack.i.h.bf16 %v1113_v44  ;;  %v1114_v58 = vunpack.i.l.bf16 %v1113_v44  ;;  %p1130_p0 = scmp.ne.s32.totalorder %s864_s8, %s1129_s20  ;;  %p1135_p2 = scmp.lt.s32.totalorder %s1129_s20, %s1129_s20 }
 0x34b   :  { %v546_v55 = vsel %vm545_vm2, %v543_v49, %v1065_v40  ;;  %v547_v56 = vsel %vm545_vm2, %v544_v50, %v1064_v41  ;;  %v516_v48 = vpop.permute.xlu1 %515  ;;  %v601_v23 = vrot.slane %v594_v22, %v593_v21  ;;  %v730_v36 = vrot.slane %v1122_v35, %v593_v21 }
 0x34c   :  { %v549_v60 = vsel %vm548_vm3, %v546_v55, %v1070_v46  ;;  %v550_v62 = vsel %vm548_vm3, %v547_v56, %v1069_v47  ;;  %p1136_p3 = por %p1135_p2, %p1134_p1 }
 0x34d   :  { %v552_v1 = vsel %vm551_vm4, %v549_v60, %v1105_v52  ;;  %v553_v2 = vsel %vm551_vm4, %v550_v62, %v1104_v53  ;;  %v518_v6 = vpop.permute.xlu0 %517  ;;  %v737_v37 = vrot.slane %v730_v36, %v593_v21 }
 0x34e   :  { %v555_v3 = vsel %vm554_vm5, %v552_v1, %v1115_v57  ;;  %v556_v45 = vsel %vm554_vm5, %v553_v2, %v1114_v58  ;;  %p1137_p4 = pnand %p1136_p3, %p1130_p0 }
 0x34f   :  { %v558_v4 = vsel %vm557_vm6, %v555_v3, %v1120_v63  ;;  %v559_v7 = vsel %vm557_vm6, %v556_v45, %v1119_v0 }
 0x350   :  { %v562_v8 = vsel %vm560_vm7, %v559_v7, %v518_v6  ;;  %v561_v59 = vsel %vm560_vm7, %v558_v4, %v516_v48 }
 0x351   :  { %v582_v9 = vrot.slane %v562_v8, 7 }
 0x353   :  { %v584_v10 = vsel %vm583_vm8, %v582_v9, %v561_v59 }
 0x354   :  { %975 = vmatmul.mubr.f32.vlgmr.msra.gmra.mrb[0].mxu0 %v584_v10 }
 0x427   :  { %v669_v24 = vpop.f32.mrb[0].mxu0 }
 0x428   :  { %v670_v25 = vadd.f32 %v669_v24, %v601_v23  ;;  %v976_v26 = vpop.f32.mrb[1].mxu0 }
 0x42a   :  { %v680_v27 = vrot.slane %v670_v25, %v593_v21 }
 0x42c   :  { %v681_v28 = vcombine.high %v680_v27, %v680_v27  ;;  %v688_v54 = vrot.slane %v680_v27, %v593_v21 }
 0x42e   :  { %v695_v29 = vrot.slane %v681_v28, %v593_v21  ;;  %v698_v30 = vmax.f32 %v688_v54, 0.0 }
 0x430   :  { %v699_v31 = vmax.f32 %v695_v29, 0.0 }
 0x432   :  { %v707_v32 = vcombine.low %v698_v30, %v699_v31 }
 0x434   :  { %v714_v33 = vrot.slane %v707_v32, %v593_v21 }
 0x436   :  { %v721_v34 = vrot.slane %v714_v33, %v593_v21 }
 0x438   :  { %986 = vmatmul.mubr.msk.f32.vlgmr.msra.gmra.mrb[8].mxu1 %vm527_vm12, %v721_v34 }
 0x50b   :  { %v807_v38 = vpop.f32.mrb[8].mxu1 }
 0x50c   :  { %v808_v39 = vadd.f32 %v807_v38, %v737_v37  ;;  %v987_v40 = vpop.f32.mrb[9].mxu1 }
 0x50e   :  { %v818_v41 = vrot.slane %v808_v39, %v593_v21 }
 0x510   :  { %v819_v42 = vcombine.high %v818_v41, %v818_v41  ;;  %v826_v43 = vrot.slane %v818_v41, %v593_v21 }
 0x512   :  { %v833_v44 = vrot.slane %v819_v42, %v593_v21  ;;  %v840_v46 = vsel %vm838_vm9, %v826_v43, -inf }
 0x514   :  { %v841_v47 = vsel %vm838_vm9, %v833_v44, -inf }
 0x515   :  { %v842_v49 = vmax.f32 %v840_v46, %v841_v47 }
 0x517   :  { %v843_v50 = vsub.f32 %v826_v43, %v842_v49  ;;  %v844_v51 = vsub.f32 %v833_v44, %v842_v49 }
 0x519   :  { %v845_v52 = vmul.f32 1.442695, %v843_v50  ;;  %v847_v53 = vmul.f32 1.442695, %v844_v51 }
 0x51b   :  { %1123 = vpow2.f32 %v845_v52 }
 0x51c   :  { %1125 = vpow2.f32 %v847_v53 }
 0x525   :  { %v1124_v55 = vpop.eup %1123 }
 0x526   :  { %v1126_v56 = vpop.eup %1125  ;;  %v850_v57 = vsel %vm849_vm10, %v1124_v55, 0.0 }
 0x527   :  { %v851_v58 = vsel %vm849_vm10, %v1126_v56, 0.0 }
 0x528   :  { %v852_v60 = vadd.f32 %v851_v58, %v850_v57 }
 0x52a   :  { %1127 = vrcp.f32 %v852_v60 }
 0x534   :  { %v1128_v62 = vpop.eup %1127 }
 0x535   :  { %v854_v63 = vmul.f32 %v1128_v62, %v1124_v55  ;;  %v855_v0 = vmul.f32 %v1128_v62, %v1126_v56 }
 0x537   :  { %856 = vst.msk [vmem:[#allocation3] sm:$0x1] %vm849_vm10, %v854_v63  ;;  %857 = vst.msk [vmem:[#allocation3 + $0x1] sm:$0x1] %vm849_vm10, %v855_v0 }
 0x538   :  { %1140 = shalt.err (!%p1137_p4)
}
 0x539   :  { %s1141_s4 = scalar_lea.hbm %s1521_s9, 32 }
 0x53a   :  { %p1142_p5 = scmp.ne.s32.totalorder %s1521_s9, %s1141_s4  ;;  %p1145_p6 = scmp.lt.u32.totalorder %s1141_s4, %s1521_s9 }
 0x53c   :  { %p1147_p7 = pnand %p1145_p6, %p1142_p5 }
 0x53e   :  { %1150 = shalt.err (!%p1147_p7)
}
 0x53f   :  { %s1175_s1 = smov 1  }
 0x540   :  { %869 = dma.vmem_to_hbm [thread:$0]  %s864_s8, 32, %s1521_s9, [#allocation4], %s1157_s3, %s1157_s3, %s1175_s1  }
 0x541   :  { %1151 = dma.done.wait [#allocation4], 32  }
 0x542   :  { %1152 = vsyncadd [#allocation4], 4294967264 }
 0x543   :  { %873 = vsyncpa [#allocation4], 1 }

</bundles_post_ra>
